<compile_context>
chip_gen: v5e
topology: v5e:2x2
jax: 0.10.0
libtpu: 0.0.40
codegen_flags: <defaults>
</compile_context>

<pallas_src>
import functools

import jax
import jax.numpy as jnp
from jax.experimental import pallas as pl
from jax.experimental.pallas import tpu as pltpu


def _make_dendro_vae_kernel(feature_dim: int, encoding_size: int):
    f_dim = feature_dim
    e_dim = encoding_size
    mat = f_dim * e_dim
    w2_off = mat + e_dim          # start of fc2 weights in the flat vector
    b2_off = 2 * mat + e_dim      # start of fc2 bias

    def kernel(w_ref, x_ref, enc_ref, dec_ref):
        # w_ref  : SMEM (W,)     f32 summed ancestor weight vector (scalar reads)
        # x_ref  : VMEM (F, TB)  f32 lane-dense input tile (batch on lanes)
        # enc_ref: VMEM (E, TB)  f32
        # dec_ref: VMEM (F, TB)  f32
        x = x_ref[...]
        tb = x.shape[1]

        # fc1 + ReLU:  enc[e, :] = relu(sum_f fc1_w[e, f] * x[f, :] + fc1_b[e])
        enc_rows = []
        for e in range(e_dim):
            acc = jnp.zeros((1, tb), jnp.float32) + w_ref[mat + e]          # bias
            for f in range(f_dim):
                acc = acc + w_ref[e * f_dim + f] * x[f:f + 1, :]
            enc_rows.append(jnp.maximum(acc, 0.0))
        enc = jnp.concatenate(enc_rows, axis=0)                             # (E, TB)
        enc_ref[...] = enc

        # fc2:  dec[f, :] = sum_e fc2_w[f, e] * enc[e, :] + fc2_b[f]
        dec_rows = []
        for f in range(f_dim):
            acc = jnp.zeros((1, tb), jnp.float32) + w_ref[b2_off + f]       # bias
            for e in range(e_dim):
                acc = acc + w_ref[w2_off + f * e_dim + e] * enc[e:e + 1, :]
            dec_rows.append(acc)
        dec_ref[...] = jnp.concatenate(dec_rows, axis=0)                    # (F, TB)

    return kernel


@functools.partial(
    jax.jit, static_argnames=("feature_dim", "encoding_size", "block_b"))
def dendro_vae_forward(weight_stack, x, *, feature_dim, encoding_size,
                       block_b=512):
    """Pallas DendroVAE forward.

    weight_stack: (L, W) stacked ancestor weights (leaf path -> root), where
                  W = 2 * feature_dim * encoding_size + encoding_size + feature_dim.
    x:            (B, feature_dim) inputs.
    Returns (encoding (B, E), decoding (B, F)) matching the PyTorch module.
    """
    f_dim = feature_dim
    e_dim = encoding_size
    w_len = 2 * f_dim * e_dim + e_dim + f_dim
    b = x.shape[0]
    assert x.shape[1] == f_dim
    assert weight_stack.shape[-1] == w_len

    # Hoisted once: torch.sum(torch.cat(weight_list), dim=0)
    wv = jnp.sum(weight_stack.reshape(-1, w_len).astype(jnp.float32), axis=0)

    # Lane-dense layout: batch -> 128-lane axis, zero-padded to a tile multiple.
    n_tiles = pl.cdiv(b, block_b)
    b_pad = n_tiles * block_b
    x_t = jnp.zeros((f_dim, b_pad), jnp.float32).at[:, :b].set(
        x.astype(jnp.float32).T)

    kernel = _make_dendro_vae_kernel(f_dim, e_dim)
    enc_t, dec_t = pl.pallas_call(
        kernel,
        out_shape=(
            jax.ShapeDtypeStruct((e_dim, b_pad), jnp.float32),
            jax.ShapeDtypeStruct((f_dim, b_pad), jnp.float32),
        ),
        grid=(n_tiles,),
        in_specs=[
            # Tiny summed weight vector: SMEM scalars (no per-step VMEM DMA).
            pl.BlockSpec(memory_space=pltpu.MemorySpace.SMEM),
            # Streaming x tile, batch on the lane axis.
            pl.BlockSpec((f_dim, block_b), lambda i: (0, i)),
        ],
        out_specs=(
            pl.BlockSpec((e_dim, block_b), lambda i: (0, i)),
            pl.BlockSpec((f_dim, block_b), lambda i: (0, i)),
        ),
        compiler_params=pltpu.CompilerParams(
            dimension_semantics=("parallel",),
        ),
    )(wv, x_t)

    encoding = enc_t[:, :b].T
    decoding = dec_t[:, :b].T
    return encoding, decoding


if __name__ == "__main__":
    key = jax.random.PRNGKey(0)
    feature_dim = 4
    encoding_size = 3
    batch = 8
    n_ancestors = 5
    weight_dim = 2 * feature_dim * encoding_size + encoding_size + feature_dim  # 31

    k1, k2 = jax.random.split(key)
    # Stacked (1, weight_dim) ancestor weights (leaf path -> root), i.e.
    # torch.cat(leaf_node.weight_list) flattened into a single (L, W) array.
    weight_stack = 0.5 * jax.random.normal(
        k1, (n_ancestors, weight_dim), jnp.float32)
    x = jax.random.normal(k2, (batch, feature_dim), jnp.float32)

    enc, dec = dendro_vae_forward(
        weight_stack, x, feature_dim=feature_dim, encoding_size=encoding_size)
    enc, dec = jax.block_until_ready((enc, dec))

    # Pure-JAX reference mirroring the PyTorch forward exactly.
    wv = jnp.sum(weight_stack, axis=0)
    mat = feature_dim * encoding_size
    fc1_w = wv[:mat].reshape(encoding_size, feature_dim)
    fc1_b = wv[mat:mat + encoding_size]
    fc2_w = wv[mat + encoding_size:2 * mat + encoding_size].reshape(
        feature_dim, encoding_size)
    fc2_b = wv[2 * mat + encoding_size:]
    enc_ref = jnp.maximum(x @ fc1_w.T + fc1_b, 0.0)
    dec_ref = enc_ref @ fc2_w.T + fc2_b

    assert enc.shape == (batch, encoding_size)
    assert dec.shape == (batch, feature_dim)
    assert jnp.allclose(enc, enc_ref, atol=1e-4, rtol=1e-4)
    assert jnp.allclose(dec, dec_ref, atol=1e-4, rtol=1e-4)
    print("KERNEL_OK")
</pallas_src>

<mosaic_0001>
module attributes {stable_mosaic.version = 11 : i64} {
  func.func @kernel(%arg0: i32, %arg1: memref<31xf32, #tpu.memory_space<smem>>, %arg2: memref<4x512xf32, #tpu.memory_space<vmem>>, %arg3: memref<3x512xf32, #tpu.memory_space<vmem>>, %arg4: memref<4x512xf32, #tpu.memory_space<vmem>>) attributes {dimension_semantics = [#tpu.dimension_semantics<parallel>], iteration_bounds = array<i64: 1>, scalar_prefetch = 0 : i64, scratch_operands = 0 : i64, tpu.core_type = #tpu.core_type<tc>, window_params = [{transform_indices = @transform_0, window_bounds = array<i64: 31>}, {transform_indices = @transform_1, window_bounds = array<i64: 4, 512>}, {transform_indices = @transform_2, window_bounds = array<i64: 3, 512>}, {transform_indices = @transform_3, window_bounds = array<i64: 4, 512>}]} {
    %c0 = arith.constant 0 : index
    %c0_0 = arith.constant 0 : index
    %0 = vector.load %arg2[%c0, %c0_0] : memref<4x512xf32, #tpu.memory_space<vmem>>, vector<4x512xf32>
    %cst = arith.constant 0.000000e+00 : f32
    %1 = vector.broadcast %cst : f32 to vector<1x512xf32>
    %c12 = arith.constant 12 : index
    %2 = memref.load %arg1[%c12] : memref<31xf32, #tpu.memory_space<smem>>
    %3 = vector.broadcast %2 : f32 to vector<1x512xf32>
    %4 = arith.addf %1, %3 : vector<1x512xf32>
    %c0_1 = arith.constant 0 : index
    %5 = memref.load %arg1[%c0_1] : memref<31xf32, #tpu.memory_space<smem>>
    %6 = vector.extract_strided_slice %0 {offsets = [0, 0], sizes = [1, 512], strides = [1, 1]} : vector<4x512xf32> to vector<1x512xf32>
    %7 = vector.broadcast %5 : f32 to vector<1x512xf32>
    %8 = arith.mulf %7, %6 : vector<1x512xf32>
    %9 = arith.addf %4, %8 : vector<1x512xf32>
    %c1 = arith.constant 1 : index
    %10 = memref.load %arg1[%c1] : memref<31xf32, #tpu.memory_space<smem>>
    %11 = vector.extract_strided_slice %0 {offsets = [1, 0], sizes = [1, 512], strides = [1, 1]} : vector<4x512xf32> to vector<1x512xf32>
    %12 = vector.broadcast %10 : f32 to vector<1x512xf32>
    %13 = arith.mulf %12, %11 : vector<1x512xf32>
    %14 = arith.addf %9, %13 : vector<1x512xf32>
    %c2 = arith.constant 2 : index
    %15 = memref.load %arg1[%c2] : memref<31xf32, #tpu.memory_space<smem>>
    %16 = vector.extract_strided_slice %0 {offsets = [2, 0], sizes = [1, 512], strides = [1, 1]} : vector<4x512xf32> to vector<1x512xf32>
    %17 = vector.broadcast %15 : f32 to vector<1x512xf32>
    %18 = arith.mulf %17, %16 : vector<1x512xf32>
    %19 = arith.addf %14, %18 : vector<1x512xf32>
    %c3 = arith.constant 3 : index
    %20 = memref.load %arg1[%c3] : memref<31xf32, #tpu.memory_space<smem>>
    %21 = vector.extract_strided_slice %0 {offsets = [3, 0], sizes = [1, 512], strides = [1, 1]} : vector<4x512xf32> to vector<1x512xf32>
    %22 = vector.broadcast %20 : f32 to vector<1x512xf32>
    %23 = arith.mulf %22, %21 : vector<1x512xf32>
    %24 = arith.addf %19, %23 : vector<1x512xf32>
    %cst_2 = arith.constant 0.000000e+00 : f32
    %25 = vector.broadcast %cst_2 : f32 to vector<1x512xf32>
    %26 = arith.maximumf %24, %25 : vector<1x512xf32>
    %cst_3 = arith.constant 0.000000e+00 : f32
    %27 = vector.broadcast %cst_3 : f32 to vector<1x512xf32>
    %c13 = arith.constant 13 : index
    %28 = memref.load %arg1[%c13] : memref<31xf32, #tpu.memory_space<smem>>
    %29 = vector.broadcast %28 : f32 to vector<1x512xf32>
    %30 = arith.addf %27, %29 : vector<1x512xf32>
    %c4 = arith.constant 4 : index
    %31 = memref.load %arg1[%c4] : memref<31xf32, #tpu.memory_space<smem>>
    %32 = vector.extract_strided_slice %0 {offsets = [0, 0], sizes = [1, 512], strides = [1, 1]} : vector<4x512xf32> to vector<1x512xf32>
    %33 = vector.broadcast %31 : f32 to vector<1x512xf32>
    %34 = arith.mulf %33, %32 : vector<1x512xf32>
    %35 = arith.addf %30, %34 : vector<1x512xf32>
    %c5 = arith.constant 5 : index
    %36 = memref.load %arg1[%c5] : memref<31xf32, #tpu.memory_space<smem>>
    %37 = vector.extract_strided_slice %0 {offsets = [1, 0], sizes = [1, 512], strides = [1, 1]} : vector<4x512xf32> to vector<1x512xf32>
    %38 = vector.broadcast %36 : f32 to vector<1x512xf32>
    %39 = arith.mulf %38, %37 : vector<1x512xf32>
    %40 = arith.addf %35, %39 : vector<1x512xf32>
    %c6 = arith.constant 6 : index
    %41 = memref.load %arg1[%c6] : memref<31xf32, #tpu.memory_space<smem>>
    %42 = vector.extract_strided_slice %0 {offsets = [2, 0], sizes = [1, 512], strides = [1, 1]} : vector<4x512xf32> to vector<1x512xf32>
    %43 = vector.broadcast %41 : f32 to vector<1x512xf32>
    %44 = arith.mulf %43, %42 : vector<1x512xf32>
    %45 = arith.addf %40, %44 : vector<1x512xf32>
    %c7 = arith.constant 7 : index
    %46 = memref.load %arg1[%c7] : memref<31xf32, #tpu.memory_space<smem>>
    %47 = vector.extract_strided_slice %0 {offsets = [3, 0], sizes = [1, 512], strides = [1, 1]} : vector<4x512xf32> to vector<1x512xf32>
    %48 = vector.broadcast %46 : f32 to vector<1x512xf32>
    %49 = arith.mulf %48, %47 : vector<1x512xf32>
    %50 = arith.addf %45, %49 : vector<1x512xf32>
    %cst_4 = arith.constant 0.000000e+00 : f32
    %51 = vector.broadcast %cst_4 : f32 to vector<1x512xf32>
    %52 = arith.maximumf %50, %51 : vector<1x512xf32>
    %cst_5 = arith.constant 0.000000e+00 : f32
    %53 = vector.broadcast %cst_5 : f32 to vector<1x512xf32>
    %c14 = arith.constant 14 : index
    %54 = memref.load %arg1[%c14] : memref<31xf32, #tpu.memory_space<smem>>
    %55 = vector.broadcast %54 : f32 to vector<1x512xf32>
    %56 = arith.addf %53, %55 : vector<1x512xf32>
    %c8 = arith.constant 8 : index
    %57 = memref.load %arg1[%c8] : memref<31xf32, #tpu.memory_space<smem>>
    %58 = vector.extract_strided_slice %0 {offsets = [0, 0], sizes = [1, 512], strides = [1, 1]} : vector<4x512xf32> to vector<1x512xf32>
    %59 = vector.broadcast %57 : f32 to vector<1x512xf32>
    %60 = arith.mulf %59, %58 : vector<1x512xf32>
    %61 = arith.addf %56, %60 : vector<1x512xf32>
    %c9 = arith.constant 9 : index
    %62 = memref.load %arg1[%c9] : memref<31xf32, #tpu.memory_space<smem>>
    %63 = vector.extract_strided_slice %0 {offsets = [1, 0], sizes = [1, 512], strides = [1, 1]} : vector<4x512xf32> to vector<1x512xf32>
    %64 = vector.broadcast %62 : f32 to vector<1x512xf32>
    %65 = arith.mulf %64, %63 : vector<1x512xf32>
    %66 = arith.addf %61, %65 : vector<1x512xf32>
    %c10 = arith.constant 10 : index
    %67 = memref.load %arg1[%c10] : memref<31xf32, #tpu.memory_space<smem>>
    %68 = vector.extract_strided_slice %0 {offsets = [2, 0], sizes = [1, 512], strides = [1, 1]} : vector<4x512xf32> to vector<1x512xf32>
    %69 = vector.broadcast %67 : f32 to vector<1x512xf32>
    %70 = arith.mulf %69, %68 : vector<1x512xf32>
    %71 = arith.addf %66, %70 : vector<1x512xf32>
    %c11 = arith.constant 11 : index
    %72 = memref.load %arg1[%c11] : memref<31xf32, #tpu.memory_space<smem>>
    %73 = vector.extract_strided_slice %0 {offsets = [3, 0], sizes = [1, 512], strides = [1, 1]} : vector<4x512xf32> to vector<1x512xf32>
    %74 = vector.broadcast %72 : f32 to vector<1x512xf32>
    %75 = arith.mulf %74, %73 : vector<1x512xf32>
    %76 = arith.addf %71, %75 : vector<1x512xf32>
    %cst_6 = arith.constant 0.000000e+00 : f32
    %77 = vector.broadcast %cst_6 : f32 to vector<1x512xf32>
    %78 = arith.maximumf %76, %77 : vector<1x512xf32>
    %79 = tpu.concatenate %26, %52, %78 in 0 : vector<1x512xf32>, vector<1x512xf32>, vector<1x512xf32> -> vector<3x512xf32>
    %c0_7 = arith.constant 0 : index
    %c0_8 = arith.constant 0 : index
    %80 = vector.load %arg3[%c0_7, %c0_8] : memref<3x512xf32, #tpu.memory_space<vmem>>, vector<3x512xf32>
    tpu.vector_store %arg3[%c0_7, %c0_8], %79 {strides = array<i32>} : memref<3x512xf32, #tpu.memory_space<vmem>>, vector<3x512xf32>,
    %cst_9 = arith.constant 0.000000e+00 : f32
    %81 = vector.broadcast %cst_9 : f32 to vector<1x512xf32>
    %c27 = arith.constant 27 : index
    %82 = memref.load %arg1[%c27] : memref<31xf32, #tpu.memory_space<smem>>
    %83 = vector.broadcast %82 : f32 to vector<1x512xf32>
    %84 = arith.addf %81, %83 : vector<1x512xf32>
    %c15 = arith.constant 15 : index
    %85 = memref.load %arg1[%c15] : memref<31xf32, #tpu.memory_space<smem>>
    %86 = vector.extract_strided_slice %79 {offsets = [0, 0], sizes = [1, 512], strides = [1, 1]} : vector<3x512xf32> to vector<1x512xf32>
    %87 = vector.broadcast %85 : f32 to vector<1x512xf32>
    %88 = arith.mulf %87, %86 : vector<1x512xf32>
    %89 = arith.addf %84, %88 : vector<1x512xf32>
    %c16 = arith.constant 16 : index
    %90 = memref.load %arg1[%c16] : memref<31xf32, #tpu.memory_space<smem>>
    %91 = vector.extract_strided_slice %79 {offsets = [1, 0], sizes = [1, 512], strides = [1, 1]} : vector<3x512xf32> to vector<1x512xf32>
    %92 = vector.broadcast %90 : f32 to vector<1x512xf32>
    %93 = arith.mulf %92, %91 : vector<1x512xf32>
    %94 = arith.addf %89, %93 : vector<1x512xf32>
    %c17 = arith.constant 17 : index
    %95 = memref.load %arg1[%c17] : memref<31xf32, #tpu.memory_space<smem>>
    %96 = vector.extract_strided_slice %79 {offsets = [2, 0], sizes = [1, 512], strides = [1, 1]} : vector<3x512xf32> to vector<1x512xf32>
    %97 = vector.broadcast %95 : f32 to vector<1x512xf32>
    %98 = arith.mulf %97, %96 : vector<1x512xf32>
    %99 = arith.addf %94, %98 : vector<1x512xf32>
    %cst_10 = arith.constant 0.000000e+00 : f32
    %100 = vector.broadcast %cst_10 : f32 to vector<1x512xf32>
    %c28 = arith.constant 28 : index
    %101 = memref.load %arg1[%c28] : memref<31xf32, #tpu.memory_space<smem>>
    %102 = vector.broadcast %101 : f32 to vector<1x512xf32>
    %103 = arith.addf %100, %102 : vector<1x512xf32>
    %c18 = arith.constant 18 : index
    %104 = memref.load %arg1[%c18] : memref<31xf32, #tpu.memory_space<smem>>
    %105 = vector.extract_strided_slice %79 {offsets = [0, 0], sizes = [1, 512], strides = [1, 1]} : vector<3x512xf32> to vector<1x512xf32>
    %106 = vector.broadcast %104 : f32 to vector<1x512xf32>
    %107 = arith.mulf %106, %105 : vector<1x512xf32>
    %108 = arith.addf %103, %107 : vector<1x512xf32>
    %c19 = arith.constant 19 : index
    %109 = memref.load %arg1[%c19] : memref<31xf32, #tpu.memory_space<smem>>
    %110 = vector.extract_strided_slice %79 {offsets = [1, 0], sizes = [1, 512], strides = [1, 1]} : vector<3x512xf32> to vector<1x512xf32>
    %111 = vector.broadcast %109 : f32 to vector<1x512xf32>
    %112 = arith.mulf %111, %110 : vector<1x512xf32>
    %113 = arith.addf %108, %112 : vector<1x512xf32>
    %c20 = arith.constant 20 : index
    %114 = memref.load %arg1[%c20] : memref<31xf32, #tpu.memory_space<smem>>
    %115 = vector.extract_strided_slice %79 {offsets = [2, 0], sizes = [1, 512], strides = [1, 1]} : vector<3x512xf32> to vector<1x512xf32>
    %116 = vector.broadcast %114 : f32 to vector<1x512xf32>
    %117 = arith.mulf %116, %115 : vector<1x512xf32>
    %118 = arith.addf %113, %117 : vector<1x512xf32>
    %cst_11 = arith.constant 0.000000e+00 : f32
    %119 = vector.broadcast %cst_11 : f32 to vector<1x512xf32>
    %c29 = arith.constant 29 : index
    %120 = memref.load %arg1[%c29] : memref<31xf32, #tpu.memory_space<smem>>
    %121 = vector.broadcast %120 : f32 to vector<1x512xf32>
    %122 = arith.addf %119, %121 : vector<1x512xf32>
    %c21 = arith.constant 21 : index
    %123 = memref.load %arg1[%c21] : memref<31xf32, #tpu.memory_space<smem>>
    %124 = vector.extract_strided_slice %79 {offsets = [0, 0], sizes = [1, 512], strides = [1, 1]} : vector<3x512xf32> to vector<1x512xf32>
    %125 = vector.broadcast %123 : f32 to vector<1x512xf32>
    %126 = arith.mulf %125, %124 : vector<1x512xf32>
    %127 = arith.addf %122, %126 : vector<1x512xf32>
    %c22 = arith.constant 22 : index
    %128 = memref.load %arg1[%c22] : memref<31xf32, #tpu.memory_space<smem>>
    %129 = vector.extract_strided_slice %79 {offsets = [1, 0], sizes = [1, 512], strides = [1, 1]} : vector<3x512xf32> to vector<1x512xf32>
    %130 = vector.broadcast %128 : f32 to vector<1x512xf32>
    %131 = arith.mulf %130, %129 : vector<1x512xf32>
    %132 = arith.addf %127, %131 : vector<1x512xf32>
    %c23 = arith.constant 23 : index
    %133 = memref.load %arg1[%c23] : memref<31xf32, #tpu.memory_space<smem>>
    %134 = vector.extract_strided_slice %79 {offsets = [2, 0], sizes = [1, 512], strides = [1, 1]} : vector<3x512xf32> to vector<1x512xf32>
    %135 = vector.broadcast %133 : f32 to vector<1x512xf32>
    %136 = arith.mulf %135, %134 : vector<1x512xf32>
    %137 = arith.addf %132, %136 : vector<1x512xf32>
    %cst_12 = arith.constant 0.000000e+00 : f32
    %138 = vector.broadcast %cst_12 : f32 to vector<1x512xf32>
    %c30 = arith.constant 30 : index
    %139 = memref.load %arg1[%c30] : memref<31xf32, #tpu.memory_space<smem>>
    %140 = vector.broadcast %139 : f32 to vector<1x512xf32>
    %141 = arith.addf %138, %140 : vector<1x512xf32>
    %c24 = arith.constant 24 : index
    %142 = memref.load %arg1[%c24] : memref<31xf32, #tpu.memory_space<smem>>
    %143 = vector.extract_strided_slice %79 {offsets = [0, 0], sizes = [1, 512], strides = [1, 1]} : vector<3x512xf32> to vector<1x512xf32>
    %144 = vector.broadcast %142 : f32 to vector<1x512xf32>
    %145 = arith.mulf %144, %143 : vector<1x512xf32>
    %146 = arith.addf %141, %145 : vector<1x512xf32>
    %c25 = arith.constant 25 : index
    %147 = memref.load %arg1[%c25] : memref<31xf32, #tpu.memory_space<smem>>
    %148 = vector.extract_strided_slice %79 {offsets = [1, 0], sizes = [1, 512], strides = [1, 1]} : vector<3x512xf32> to vector<1x512xf32>
    %149 = vector.broadcast %147 : f32 to vector<1x512xf32>
    %150 = arith.mulf %149, %148 : vector<1x512xf32>
    %151 = arith.addf %146, %150 : vector<1x512xf32>
    %c26 = arith.constant 26 : index
    %152 = memref.load %arg1[%c26] : memref<31xf32, #tpu.memory_space<smem>>
    %153 = vector.extract_strided_slice %79 {offsets = [2, 0], sizes = [1, 512], strides = [1, 1]} : vector<3x512xf32> to vector<1x512xf32>
    %154 = vector.broadcast %152 : f32 to vector<1x512xf32>
    %155 = arith.mulf %154, %153 : vector<1x512xf32>
    %156 = arith.addf %151, %155 : vector<1x512xf32>
    %157 = tpu.concatenate %99, %118, %137, %156 in 0 : vector<1x512xf32>, vector<1x512xf32>, vector<1x512xf32>, vector<1x512xf32> -> vector<4x512xf32>
    %c0_13 = arith.constant 0 : index
    %c0_14 = arith.constant 0 : index
    %158 = vector.load %arg4[%c0_13, %c0_14] : memref<4x512xf32, #tpu.memory_space<vmem>>, vector<4x512xf32>
    tpu.vector_store %arg4[%c0_13, %c0_14], %157 {strides = array<i32>} : memref<4x512xf32, #tpu.memory_space<vmem>>, vector<4x512xf32>,
    return
  }
  func.func @transform_0(%arg0: i32) -> i32 {
    %c0_i32 = arith.constant 0 : i32
    %c0_i32_0 = arith.constant 0 : i32
    return %c0_i32 : i32
  }
  func.func @transform_1(%arg0: i32) -> (i32, i32) {
    %c0_i32 = arith.constant 0 : i32
    %c0_i32_0 = arith.constant 0 : i32
    return %c0_i32, %arg0 : i32, i32
  }
  func.func @transform_2(%arg0: i32) -> (i32, i32) {
    %c0_i32 = arith.constant 0 : i32
    %c0_i32_0 = arith.constant 0 : i32
    return %c0_i32, %arg0 : i32, i32
  }
  func.func @transform_3(%arg0: i32) -> (i32, i32) {
    %c0_i32 = arith.constant 0 : i32
    %c0_i32_0 = arith.constant 0 : i32
    return %c0_i32, %arg0 : i32, i32
  }
}

</mosaic_0001>

<bundles_post_ra>
// kernel: dendro_vae_forward.1
= control target key start
LH: loop header
LB: loop body
LE: loop exit
PB: predicated region body
PF: predicated region fallthrough
CT: control target
= control target key end

     0   :  { %9 = vsyncpa [#allocation3], 0  ;;  %s601_s15 = smov [#allocation2]   ;;  %s901_s0 = inlined_call_operand.vmem [shape: f32[31], index: 0, kind: input, shape index: {}]   ;;  %s902_s1 = inlined_call_operand.vmem [shape: f32[4,512], index: 1, kind: input, shape index: {}]   ;;  %s903_s2 = inlined_call_operand.vmem [shape: f32[3,512], index: 2, kind: output, shape index: {0}]   ;;  %s904_s3 = inlined_call_operand.vmem [shape: f32[4,512], index: 3, kind: output, shape index: {1}]  }
   0x1   :  { %s15_s14 = sshll.u32 %s901_s0, 4  ;;  %s16_s14 = int_to_ptr.vmem [resolvable:$true] %s15_s14 }
   0x2   :  { %18 = dma.vmem_to_smem %s16_s14, 16, %s601_s15, [#allocation3]  }
   0x3   :  { %599 = dma.done.wait [#allocation3], 16  }
   0x4   :  { %600 = vsyncadd [#allocation3], 4294967280 }
   0x5   :  { %25 = sfence }
   0x6   :  { %s538_s16 = sld [smem:[#allocation2 + $0xc]]  ;;  %v628_v0 = vld [vmem:[%s902_s1] sm:$0xff]  ;;  %v633_v1 = vld [vmem:[%s902_s1 + $0x8] sm:$0xff]  ;;  %vm217_vm0 = vcmask 1040384   ;;  %vm222_vm1 = vcmask 1041408   ;;  %vm233_vm2 = vcmask 1043456  }
   0x7   :  { %s31_s17 = sld [smem:[#allocation2]]  ;;  %vm512_vm3 = vcmask 1042432  }
   0x8   :  { %s539_s18 = sld [smem:[#allocation2 + $0x1]] }
   0x9   :  { %s542_s19 = sld [smem:[#allocation2 + $0x2]] }
   0xa   :  { %s545_s20 = sld [smem:[#allocation2 + $0x3]] }
   0xb   :  { %s635_s0 = sld [smem:[#allocation2 + $0xd]] }
   0xc   :  { %s637_s25 = sld [smem:[#allocation2 + $0x4]]  ;;  %v29_v2 = vstv %s538_s16 }
   0xd   :  { %v32_v3 = vstv %s31_s17  ;;  %s639_s26 = sld [smem:[#allocation2 + $0x5]] }
   0xe   :  { %v33_v4 = vmul.f32 %v32_v3, %v628_v0  ;;  %v34_v5 = vmul.f32 %v32_v3, %v633_v1  ;;  %v38_v6 = vstv %s539_s18  ;;  %s643_s27 = sld [smem:[#allocation2 + $0x6]] }
   0xf   :  { %v39_v7 = vmul.f32 %v38_v6, %v628_v0  ;;  %v40_v8 = vmul.f32 %v38_v6, %v633_v1  ;;  %v52_v9 = vstv %s542_s19  ;;  %s647_s1 = sld [smem:[#allocation2 + $0x7]] }
  0x10   :  { %v35_v10 = vadd.f32 %v33_v4, %v29_v2  ;;  %v36_v11 = vadd.f32 %v34_v5, %v29_v2  ;;  %v53_v12 = vmul.f32 %v52_v9, %v628_v0  ;;  %v54_v13 = vmul.f32 %v52_v9, %v633_v1  ;;  %s651_s28 = sld [smem:[#allocation2 + $0xe]] }
  0x11   :  { %v540_v14 = vrot.slane %v39_v7, 9  ;;  %v541_v15 = vrot.slane %v40_v8, 9  ;;  %v66_v16 = vstv %s545_s20  ;;  %v82_v17 = vstv %s635_s0  ;;  %s654_s29 = sld [smem:[#allocation2 + $0x8]] }
  0x12   :  { %v543_v18 = vrot.slane %v53_v12, 10  ;;  %v544_v19 = vrot.slane %v54_v13, 10  ;;  %v67_v20 = vmul.f32 %v66_v16, %v628_v0  ;;  %v68_v21 = vmul.f32 %v66_v16, %v633_v1  ;;  %s658_s30 = sld [smem:[#allocation2 + $0x9]] }
  0x13   :  { %v49_v22 = vadd.f32 %v540_v14, %v35_v10  ;;  %v50_v23 = vadd.f32 %v541_v15, %v36_v11  ;;  %v85_v24 = vstv %s637_s25  ;;  %v91_v25 = vstv %s639_s26  ;;  %s662_s4 = sld [smem:[#allocation2 + $0xa]] }
  0x14   :  { %v546_v26 = vrot.slane %v67_v20, 11  ;;  %v547_v27 = vrot.slane %v68_v21, 11  ;;  %v86_v28 = vmul.f32 %v85_v24, %v628_v0  ;;  %v87_v29 = vmul.f32 %v85_v24, %v633_v1  ;;  %s668_s5 = sld [smem:[#allocation2 + $0xb]] }
  0x15   :  { %v63_v30 = vadd.f32 %v543_v18, %v49_v22  ;;  %v64_v31 = vadd.f32 %v544_v19, %v50_v23  ;;  %v92_v32 = vmul.f32 %v91_v25, %v628_v0  ;;  %v93_v33 = vmul.f32 %v91_v25, %v633_v1  ;;  %s672_s6 = sld [smem:[#allocation2 + $0x1b]] }
  0x16   :  { %v88_v34 = vadd.f32 %v86_v28, %v82_v17  ;;  %v89_v35 = vadd.f32 %v87_v29, %v82_v17  ;;  %v105_v36 = vstv %s643_s27  ;;  %v119_v37 = vstv %s647_s1  ;;  %s674_s7 = sld [smem:[#allocation2 + $0xf]] }
  0x17   :  { %v77_v38 = vadd.f32 %v546_v26, %v63_v30  ;;  %v78_v39 = vadd.f32 %v547_v27, %v64_v31  ;;  %v551_v40 = vrot.slane %v92_v32, 9  ;;  %v552_v41 = vrot.slane %v93_v33, 9  ;;  %s680_s8 = sld [smem:[#allocation2 + $0x10]] }
  0x18   :  { %v106_v42 = vmul.f32 %v105_v36, %v628_v0  ;;  %v107_v43 = vmul.f32 %v105_v36, %v633_v1  ;;  %v120_v44 = vmul.f32 %v119_v37, %v628_v0  ;;  %v121_v45 = vmul.f32 %v119_v37, %v633_v1  ;;  %s682_s9 = sld [smem:[#allocation2 + $0x11]] }
  0x19   :  { %v79_v46 = vmax.f32 %v77_v38, 0.0  ;;  %v80_v47 = vmax.f32 %v78_v39, 0.0  ;;  %v102_v48 = vadd.f32 %v551_v40, %v88_v34  ;;  %v103_v49 = vadd.f32 %v552_v41, %v89_v35  ;;  %s684_s10 = sld [smem:[#allocation2 + $0x1c]] }
  0x1a   :  { %v554_v50 = vrot.slane %v106_v42, 10  ;;  %v555_v51 = vrot.slane %v107_v43, 10  ;;  %v557_v52 = vrot.slane %v120_v44, 11  ;;  %v558_v53 = vrot.slane %v121_v45, 11  ;;  %s690_s11 = sld [smem:[#allocation2 + $0x12]] }
  0x1b   :  { %v135_v54 = vstv %s651_s28  ;;  %v138_v55 = vstv %s654_s29  ;;  %v144_v56 = vstv %s658_s30  ;;  %v158_v57 = vstv %s662_s4  ;;  %s694_s12 = sld [smem:[#allocation2 + $0x13]] }
  0x1c   :  { %v116_v58 = vadd.f32 %v554_v50, %v102_v48  ;;  %v117_v59 = vadd.f32 %v555_v51, %v103_v49  ;;  %v139_v60 = vmul.f32 %v138_v55, %v628_v0  ;;  %v140_v61 = vmul.f32 %v138_v55, %v633_v1  ;;  %s700_s13 = sld [smem:[#allocation2 + $0x14]] }
  0x1d   :  { %v145_v62 = vmul.f32 %v144_v56, %v628_v0  ;;  %v146_v63 = vmul.f32 %v144_v56, %v633_v1  ;;  %v159_v2 = vmul.f32 %v158_v57, %v628_v0  ;;  %v160_v3 = vmul.f32 %v158_v57, %v633_v1  ;;  %s702_s14 = sld [smem:[#allocation2 + $0x1d]] }
  0x1e   :  { %v130_v4 = vadd.f32 %v557_v52, %v116_v58  ;;  %v131_v5 = vadd.f32 %v558_v53, %v117_v59  ;;  %v141_v6 = vadd.f32 %v139_v60, %v135_v54  ;;  %v142_v7 = vadd.f32 %v140_v61, %v135_v54  ;;  %s704_s15 = sld [smem:[#allocation2 + $0x15]] }
  0x1f   :  { %v562_v8 = vrot.slane %v145_v62, 9  ;;  %v563_v9 = vrot.slane %v146_v63, 9  ;;  %v565_v10 = vrot.slane %v159_v2, 10  ;;  %v566_v11 = vrot.slane %v160_v3, 10  ;;  %s707_s16 = sld [smem:[#allocation2 + $0x16]] }
  0x20   :  { %v132_v12 = vmax.f32 %v130_v4, 0.0  ;;  %v133_v13 = vmax.f32 %v131_v5, 0.0  ;;  %v172_v14 = vstv %s668_s5  ;;  %v189_v15 = vperm.slane %v79_v46, 0  ;;  %s711_s17 = sld [smem:[#allocation2 + $0x17]] }
  0x21   :  { %v155_v16 = vadd.f32 %v562_v8, %v141_v6  ;;  %v156_v17 = vadd.f32 %v563_v9, %v142_v7  ;;  %v173_v18 = vmul.f32 %v172_v14, %v628_v0  ;;  %v174_v19 = vmul.f32 %v172_v14, %v633_v1  ;;  %s713_s18 = sld [smem:[#allocation2 + $0x1e]] }
  0x22   :  { %v190_v20 = vperm.slane %v79_v46, 4  ;;  %v191_v21 = vperm.slane %v80_v47, 0  ;;  %v192_v22 = vperm.slane %v80_v47, 4  ;;  %v199_v23 = vperm.slane %v132_v12, 0  ;;  %s826_s23 = sld [smem:[#allocation2 + $0x19]] }
  0x23   :  { %v169_v24 = vadd.f32 %v565_v10, %v155_v16  ;;  %v170_v25 = vadd.f32 %v566_v11, %v156_v17  ;;  %v568_v26 = vrot.slane %v173_v18, 11  ;;  %v569_v27 = vrot.slane %v174_v19, 11  ;;  %s856_s24 = sld [smem:[#allocation2 + $0x1a]] }
  0x24   :  { %v200_v0 = vperm.slane %v132_v12, 4  ;;  %v201_v1 = vperm.slane %v133_v13, 0  ;;  %v202_v28 = vperm.slane %v133_v13, 4  ;;  %v218_v29 = vsel %vm217_vm0, %v189_v15, %v199_v23 }
  0x25   :  { %v183_v30 = vadd.f32 %v568_v26, %v169_v24  ;;  %v184_v31 = vadd.f32 %v569_v27, %v170_v25  ;;  %v241_v32 = vstv %s672_s6  ;;  %v244_v33 = vstv %s674_s7 }
  0x26   :  { %v219_v34 = vsel %vm217_vm0, %v190_v20, %v200_v0  ;;  %v220_v35 = vsel %vm217_vm0, %v191_v21, %v201_v1  ;;  %v221_v36 = vsel %vm217_vm0, %v192_v22, %v202_v28  ;;  %v254_v37 = vstv %s680_s8 }
  0x27   :  { %v185_v38 = vmax.f32 %v183_v30, 0.0  ;;  %v186_v39 = vmax.f32 %v184_v31, 0.0  ;;  %v276_v40 = vstv %s682_s9  ;;  %v724_v41 = vstv %s684_s10 }
  0x28   :  { %v301_v42 = vstv %s690_s11  ;;  %v728_v43 = vstv %s694_s12  ;;  %v731_v44 = vstv %s700_s13  ;;  %v734_v45 = vstv %s702_s14 }
  0x29   :  { %v209_v46 = vperm.slane %v185_v38, 0  ;;  %v210_v47 = vperm.slane %v185_v38, 4  ;;  %v211_v48 = vperm.slane %v186_v39, 0  ;;  %v212_v49 = vperm.slane %v186_v39, 4 }
  0x2a   :  { %v737_v50 = vstv %s704_s15  ;;  %v740_v51 = vstv %s707_s16  ;;  %v743_v52 = vstv %s711_s17  ;;  %v746_v53 = vstv %s713_s18 }
  0x2b   :  { %v749_v54 = vsel %vm222_vm1, %v218_v29, %v209_v46  ;;  %v752_v55 = vsel %vm222_vm1, %v219_v34, %v210_v47  ;;  %v755_v56 = vsel %vm222_vm1, %v220_v35, %v211_v48  ;;  %v758_v57 = vsel %vm222_vm1, %v221_v36, %v212_v49 }
  0x2c   :  { %v231_v58 = vrot.slane %v752_v55, 4  ;;  %v232_v59 = vrot.slane %v758_v57, 4  ;;  %v245_v60 = vmul.f32 %v244_v33, %v749_v54  ;;  %v246_v61 = vmul.f32 %v244_v33, %v752_v55 }
  0x2d   :  { %v247_v62 = vmul.f32 %v244_v33, %v755_v56  ;;  %v248_v63 = vmul.f32 %v244_v33, %v758_v57  ;;  %v255_v2 = vmul.f32 %v254_v37, %v749_v54  ;;  %v256_v3 = vmul.f32 %v254_v37, %v752_v55 }
  0x2e   :  { %v234_v4 = vsel %vm233_vm2, %v749_v54, %v231_v58  ;;  %v235_v5 = vsel %vm233_vm2, %v755_v56, %v232_v59  ;;  %v249_v6 = vadd.f32 %v245_v60, %v241_v32  ;;  %v250_v7 = vadd.f32 %v246_v61, %v241_v32 }
  0x2f   :  { %238 = vst [vmem:[%s903_s2] sm:$0x77] %v234_v4  ;;  %v251_v8 = vadd.f32 %v247_v62, %v241_v32  ;;  %v252_v9 = vadd.f32 %v248_v63, %v241_v32  ;;  %v257_v10 = vmul.f32 %v254_v37, %v755_v56  ;;  %v258_v11 = vmul.f32 %v254_v37, %v758_v57 }
  0x30   :  { %239 = vst [vmem:[%s903_s2 + $0x8] sm:$0x77] %v235_v5  ;;  %v263_v12 = vrot.slane %v255_v2, 1  ;;  %v264_v13 = vrot.slane %v256_v3, 1  ;;  %v277_v14 = vmul.f32 %v276_v40, %v749_v54  ;;  %v278_v15 = vmul.f32 %v276_v40, %v752_v55  ;;  %s816_s2 = sld [smem:[#allocation2 + $0x18]] }
  0x31   :  { %v265_v16 = vrot.slane %v257_v10, 1  ;;  %v266_v17 = vrot.slane %v258_v11, 1  ;;  %v279_v18 = vmul.f32 %v276_v40, %v755_v56  ;;  %v280_v19 = vmul.f32 %v276_v40, %v758_v57 }
  0x32   :  { %v271_v20 = vadd.f32 %v263_v12, %v249_v6  ;;  %v272_v21 = vadd.f32 %v264_v13, %v250_v7  ;;  %v285_v22 = vrot.slane %v277_v14, 2  ;;  %v286_v23 = vrot.slane %v278_v15, 2 }
  0x33   :  { %v273_v24 = vadd.f32 %v265_v16, %v251_v8  ;;  %v274_v25 = vadd.f32 %v266_v17, %v252_v9  ;;  %v287_v26 = vrot.slane %v279_v18, 2  ;;  %v288_v27 = vrot.slane %v280_v19, 2 }
  0x34   :  { %v784_v0 = vadd.f32 %v285_v22, %v271_v20  ;;  %v786_v1 = vadd.f32 %v286_v23, %v272_v21  ;;  %v302_v28 = vmul.f32 %v301_v42, %v749_v54  ;;  %v303_v29 = vmul.f32 %v301_v42, %v752_v55 }
  0x35   :  { %v790_v30 = vadd.f32 %v287_v26, %v273_v24  ;;  %v792_v31 = vadd.f32 %v288_v27, %v274_v25  ;;  %v304_v32 = vmul.f32 %v301_v42, %v755_v56  ;;  %v305_v33 = vmul.f32 %v301_v42, %v758_v57 }
  0x36   :  { %v306_v34 = vadd.f32 %v302_v28, %v724_v41  ;;  %v307_v35 = vadd.f32 %v303_v29, %v724_v41  ;;  %v312_v36 = vmul.f32 %v728_v43, %v749_v54  ;;  %v313_v37 = vmul.f32 %v728_v43, %v752_v55 }
  0x37   :  { %v308_v38 = vadd.f32 %v304_v32, %v724_v41  ;;  %v309_v39 = vadd.f32 %v305_v33, %v724_v41  ;;  %v314_v40 = vmul.f32 %v728_v43, %v755_v56  ;;  %v315_v42 = vmul.f32 %v728_v43, %v758_v57 }
  0x38   :  { %v320_v46 = vrot.slane %v312_v36, 1  ;;  %v321_v47 = vrot.slane %v313_v37, 1  ;;  %v334_v48 = vmul.f32 %v731_v44, %v749_v54  ;;  %v335_v49 = vmul.f32 %v731_v44, %v752_v55 }
  0x39   :  { %v322_v58 = vrot.slane %v314_v40, 1  ;;  %v323_v59 = vrot.slane %v315_v42, 1  ;;  %v336_v60 = vmul.f32 %v731_v44, %v755_v56  ;;  %v337_v41 = vmul.f32 %v731_v44, %v758_v57 }
  0x3a   :  { %v328_v61 = vadd.f32 %v320_v46, %v306_v34  ;;  %v329_v62 = vadd.f32 %v321_v47, %v307_v35  ;;  %v342_v63 = vrot.slane %v334_v48, 2  ;;  %v343_v43 = vrot.slane %v335_v49, 2 }
  0x3b   :  { %v330_v2 = vadd.f32 %v322_v58, %v308_v38  ;;  %v331_v3 = vadd.f32 %v323_v59, %v309_v39  ;;  %v344_v4 = vrot.slane %v336_v60, 2  ;;  %v345_v5 = vrot.slane %v337_v41, 2 }
  0x3c   :  { %v818_v6 = vadd.f32 %v342_v63, %v328_v61  ;;  %v820_v7 = vadd.f32 %v343_v43, %v329_v62  ;;  %v359_v8 = vmul.f32 %v737_v50, %v749_v54  ;;  %v360_v44 = vmul.f32 %v737_v50, %v752_v55 }
  0x3d   :  { %v828_v9 = vadd.f32 %v344_v4, %v330_v2  ;;  %v830_v10 = vadd.f32 %v345_v5, %v331_v3  ;;  %v361_v11 = vmul.f32 %v737_v50, %v755_v56  ;;  %v362_v12 = vmul.f32 %v737_v50, %v758_v57 }
  0x3e   :  { %v363_v13 = vadd.f32 %v359_v8, %v734_v45  ;;  %v364_v14 = vadd.f32 %v360_v44, %v734_v45  ;;  %v369_v15 = vmul.f32 %v740_v51, %v749_v54  ;;  %v370_v16 = vmul.f32 %v740_v51, %v752_v55 }
  0x3f   :  { %v365_v17 = vadd.f32 %v361_v11, %v734_v45  ;;  %v366_v18 = vadd.f32 %v362_v12, %v734_v45  ;;  %v371_v19 = vmul.f32 %v740_v51, %v755_v56  ;;  %v372_v50 = vmul.f32 %v740_v51, %v758_v57 }
  0x40   :  { %v377_v20 = vrot.slane %v369_v15, 1  ;;  %v378_v21 = vrot.slane %v370_v16, 1  ;;  %v391_v22 = vmul.f32 %v743_v52, %v749_v54  ;;  %v392_v23 = vmul.f32 %v743_v52, %v752_v55 }
  0x41   :  { %v379_v24 = vrot.slane %v371_v19, 1  ;;  %v380_v25 = vrot.slane %v372_v50, 1  ;;  %v393_v45 = vmul.f32 %v743_v52, %v755_v56  ;;  %v394_v26 = vmul.f32 %v743_v52, %v758_v57 }
  0x42   :  { %v385_v51 = vadd.f32 %v377_v20, %v363_v13  ;;  %v386_v27 = vadd.f32 %v378_v21, %v364_v14  ;;  %v399_v28 = vrot.slane %v391_v22, 2  ;;  %v400_v29 = vrot.slane %v392_v23, 2 }
  0x43   :  { %v387_v32 = vadd.f32 %v379_v24, %v365_v17  ;;  %v388_v33 = vadd.f32 %v380_v25, %v366_v18  ;;  %v401_v34 = vrot.slane %v393_v45, 2  ;;  %v402_v35 = vrot.slane %v394_v26, 2 }
  0x44   :  { %v407_v36 = vadd.f32 %v399_v28, %v385_v51  ;;  %v408_v37 = vadd.f32 %v400_v29, %v386_v27  ;;  %v415_v38 = vstv %s816_s2  ;;  %v425_v39 = vstv %s826_s23 }
  0x45   :  { %v409_v40 = vadd.f32 %v401_v34, %v387_v32  ;;  %v410_v42 = vadd.f32 %v402_v35, %v388_v33  ;;  %v416_v46 = vmul.f32 %v415_v38, %v749_v54  ;;  %v417_v52 = vmul.f32 %v415_v38, %v752_v55 }
  0x46   :  { %v418_v47 = vmul.f32 %v415_v38, %v755_v56  ;;  %v419_v48 = vmul.f32 %v415_v38, %v758_v57  ;;  %v426_v49 = vmul.f32 %v425_v39, %v749_v54  ;;  %v427_v58 = vmul.f32 %v425_v39, %v752_v55 }
  0x47   :  { %v420_v59 = vadd.f32 %v416_v46, %v746_v53  ;;  %v421_v60 = vadd.f32 %v417_v52, %v746_v53  ;;  %v428_v41 = vmul.f32 %v425_v39, %v755_v56  ;;  %v429_v61 = vmul.f32 %v425_v39, %v758_v57 }
  0x48   :  { %v422_v62 = vadd.f32 %v418_v47, %v746_v53  ;;  %v423_v63 = vadd.f32 %v419_v48, %v746_v53  ;;  %v434_v43 = vrot.slane %v426_v49, 1  ;;  %v435_v2 = vrot.slane %v427_v58, 1 }
  0x49   :  { %v436_v3 = vrot.slane %v428_v41, 1  ;;  %v437_v4 = vrot.slane %v429_v61, 1  ;;  %v447_v5 = vstv %s856_s24  ;;  %v472_v8 = vrot.slane %v818_v6, 7 }
  0x4a   :  { %v442_v44 = vadd.f32 %v434_v43, %v420_v59  ;;  %v443_v11 = vadd.f32 %v435_v2, %v421_v60  ;;  %v448_v12 = vmul.f32 %v447_v5, %v749_v54  ;;  %v449_v13 = vmul.f32 %v447_v5, %v752_v55 }
  0x4b   :  { %v444_v14 = vadd.f32 %v436_v3, %v422_v62  ;;  %v445_v15 = vadd.f32 %v437_v4, %v423_v63  ;;  %v450_v16 = vmul.f32 %v447_v5, %v755_v56  ;;  %v451_v17 = vmul.f32 %v447_v5, %v758_v57 }
  0x4c   :  { %v456_v53 = vrot.slane %v448_v12, 2  ;;  %v457_v18 = vrot.slane %v449_v13, 2  ;;  %v473_v19 = vrot.slane %v820_v7, 7  ;;  %v474_v50 = vrot.slane %v828_v9, 7 }
  0x4d   :  { %v458_v20 = vrot.slane %v450_v16, 2  ;;  %v459_v6 = vrot.slane %v451_v17, 2  ;;  %v475_v21 = vrot.slane %v830_v10, 7  ;;  %v484_v22 = vrot.slane %v407_v36, 6 }
  0x4e   :  { %v464_v54 = vadd.f32 %v456_v53, %v442_v44  ;;  %v465_v23 = vadd.f32 %v457_v18, %v443_v11  ;;  %v485_v55 = vrot.slane %v408_v37, 6  ;;  %v486_v24 = vrot.slane %v409_v40, 6 }
  0x4f   :  { %v466_v25 = vadd.f32 %v458_v20, %v444_v14  ;;  %v467_v45 = vadd.f32 %v459_v6, %v445_v15  ;;  %v487_v56 = vrot.slane %v410_v42, 6  ;;  %v504_v57 = vsel %vm217_vm0, %v784_v0, %v472_v8 }
  0x50   :  { %v496_v26 = vrot.slane %v464_v54, 5  ;;  %v497_v51 = vrot.slane %v465_v23, 5  ;;  %v505_v7 = vsel %vm217_vm0, %v786_v1, %v473_v19  ;;  %v506_v9 = vsel %vm217_vm0, %v790_v30, %v474_v50 }
  0x51   :  { %v498_v10 = vrot.slane %v466_v25, 5  ;;  %v499_v27 = vrot.slane %v467_v45, 5  ;;  %v507_v28 = vsel %vm217_vm0, %v792_v31, %v475_v21  ;;  %v508_v29 = vsel %vm222_vm1, %v504_v57, %v484_v22 }
  0x52   :  { %v509_v32 = vsel %vm222_vm1, %v505_v7, %v485_v55  ;;  %v510_v33 = vsel %vm222_vm1, %v506_v9, %v486_v24  ;;  %v511_v0 = vsel %vm222_vm1, %v507_v28, %v487_v56  ;;  %v513_v34 = vsel %vm512_vm3, %v508_v29, %v496_v26 }
  0x53   :  { %v514_v35 = vsel %vm512_vm3, %v509_v32, %v497_v51  ;;  %v515_v1 = vsel %vm512_vm3, %v510_v33, %v498_v10  ;;  %v516_v36 = vsel %vm512_vm3, %v511_v0, %v499_v27 }
  0x54   :  { %v521_v37 = vrot.slane %v514_v35, 4  ;;  %v522_v30 = vrot.slane %v516_v36, 4 }
  0x56   :  { %v523_v38 = vsel %vm233_vm2, %v513_v34, %v521_v37  ;;  %v524_v39 = vsel %vm233_vm2, %v515_v1, %v522_v30 }
  0x57   :  { %527 = vst [vmem:[%s904_s3] sm:$0xff] %v523_v38 }
  0x58   :  { %528 = vst [vmem:[%s904_s3 + $0x8] sm:$0xff] %v524_v39 }
  0x59   :  { %537 = vsyncpa [#allocation3], 1 }

</bundles_post_ra>
